<compile_context>
chip_gen: v6e
topology: v6e:2x2x1
jax: 0.10.0
libtpu: 0.0.40
codegen_flags: <defaults>
</compile_context>

<pallas_src>
import functools
import math

import jax
import jax.numpy as jnp
import numpy as np
from jax.experimental import pallas as pl
from jax.experimental.pallas import tpu as pltpu


# ----------------------------------------------------------------------------
# Fused Pallas kernel
# ----------------------------------------------------------------------------
def _fused_net_kernel(x_ref, w1_ref, t2_ref, w3_ref, wh_ref, whd_ref, b_ref,
                      box_ref, logit_ref, *,
                      n_row_blocks, slice_stride, slice_width,
                      n1, n2, n3, n4, n_box, bias_offs):
    o1, o2, o3, o4, o5 = bias_offs

    def mm(h, w):
        # bf16 MXU operands, f32 accumulation.
        return jnp.dot(h.astype(jnp.bfloat16), w,
                       preferred_element_type=jnp.float32)

    b1 = b_ref[:, o1:o1 + n1]                                  # (1, n1) f32
    bp = x_ref.shape[0]

    # conv1 (per-output-row band matmul) + ReLU, fused-accumulated straight
    # into conv2 (whose output is a single spatial position).
    acc2 = jnp.zeros((bp, n2), jnp.float32)
    for ho in range(n_row_blocks):                             # static unroll
        xs = x_ref[:, ho * slice_stride: ho * slice_stride + slice_width]
        h1 = jnp.maximum(mm(xs, w1_ref[...]) + b1, 0.0)        # (Bp, n1) f32
        acc2 = acc2 + mm(h1, t2_ref[ho])                       # (Bp, n2) f32

    h = jnp.maximum(acc2 + b_ref[:, o2:o2 + n2], 0.0)          # conv2 + ReLU
    h = jnp.maximum(mm(h, w3_ref[...]) + b_ref[:, o3:o3 + n3], 0.0)   # conv3
    h = jnp.maximum(mm(h, wh_ref[...]) + b_ref[:, o4:o4 + n4], 0.0)   # hidden
    y = mm(h, whd_ref[...]) + b_ref[:, o5:o5 + n_box + 1]      # fused heads

    box_ref[...] = jnp.maximum(y[:, :n_box], 0.0)              # box: ReLU
    logit_ref[...] = jax.nn.sigmoid(y[:, n_box:n_box + 1])     # logit: sigmoid


# ----------------------------------------------------------------------------
# One-time host-side parameter folding
# ----------------------------------------------------------------------------
def prepare_fused_params(params, n_c, h_in, w_in):
    """Fold the Net into five small dense layers (conv1 as a shared row-band
    matrix, conv2/conv3 as dense matrices — their output spatial size is 1x1)."""
    w1, b1 = (np.asarray(a, np.float32) for a in params["conv1"])
    w2, b2 = (np.asarray(a, np.float32) for a in params["conv2"])
    w3, b3 = (np.asarray(a, np.float32) for a in params["conv3"])
    wh, bh = (np.asarray(a, np.float32) for a in params["hidden"])
    wb, bb = (np.asarray(a, np.float32) for a in params["box"])
    wl, bl = (np.asarray(a, np.float32) for a in params["logit"])

    s1, s2 = 2, 2
    c1o, c1i, k1, _ = w1.shape
    c2o, c2i, k2, _ = w2.shape
    c3o, c3i, k3, _ = w3.shape
    assert c1i == n_c and c2i == c1o and c3i == c2o and k3 == 1
    h1 = (h_in - k1) // s1 + 1
    w1o = (w_in - k1) // s1 + 1
    h2 = (h1 - k2) // s2 + 1
    w2o = (w1o - k2) // s2 + 1
    assert h2 == 1 and w2o == 1, "fold assumes conv2 collapses spatial to 1x1"
    assert wh.shape[0] == c3o, "n_feature must equal conv3 flat size"

    # conv1 as a row-band matrix shared by all output rows ho.
    # Input is flattened as (hi, ci, wi); the slice for output row ho is the
    # contiguous lane band [ho*slice_stride, ho*slice_stride + slice_width).
    slice_stride = s1 * n_c * w_in                 # 128
    slice_width = k1 * n_c * w_in                  # 320
    n1 = c1o * w1o                                 # 48, columns = co*w1o + wo

    w1_band = np.zeros((slice_width, n1), np.float32)
    for kh in range(k1):
        for ci in range(n_c):
            for co in range(c1o):
                for wo in range(w1o):
                    for kw in range(k1):
                        wi = s1 * wo + kw
                        w1_band[kh * n_c * w_in + ci * w_in + wi,
                                co * w1o + wo] = w1[co, ci, kh, kw]
    b1_vec = np.repeat(b1, w1o)                    # bias per (co, wo) column

    # conv2 fold, permuted to consume the per-row conv1 blocks directly:
    # t2_perm[ho, co*w1o + wo, n] multiplies relu(conv1)[b, co, ho, wo].
    t2_perm = np.zeros((h1, n1, c2o), np.float32)
    for n in range(c2o):
        for co in range(c1o):
            for ph in range(k2):
                for pw in range(k2):
                    t2_perm[ph, co * w1o + pw, n] = w2[n, co, ph, pw]

    # conv3 is a 1x1 conv on a 1x1 map -> plain linear (c2o -> c3o).
    w3_mat = w3[:, :, 0, 0].T                      # (16, 8)

    w_head = np.concatenate([wb, wl], axis=1)      # (n_hidden, n_output)
    b_head = np.concatenate([bb, bl], axis=0)

    # Pack all biases into one lane-dense (1, 128) f32 operand.
    bias_list = [b1_vec, b2, b3, bh, b_head]
    offs = [0]
    for v in bias_list:
        offs.append(offs[-1] + len(v))
    packed_width = ((offs[-1] + 127) // 128) * 128
    bias_packed = np.zeros((1, packed_width), np.float32)
    for v, o in zip(bias_list, offs[:-1]):
        bias_packed[0, o:o + len(v)] = v

    mats = dict(
        w1=jnp.asarray(w1_band, jnp.bfloat16),
        t2=jnp.asarray(t2_perm, jnp.bfloat16),
        w3=jnp.asarray(w3_mat, jnp.bfloat16),
        wh=jnp.asarray(wh, jnp.bfloat16),
        whd=jnp.asarray(w_head, jnp.bfloat16),
        biases=jnp.asarray(bias_packed, jnp.float32),
    )
    meta = dict(
        n_row_blocks=h1, slice_stride=slice_stride, slice_width=slice_width,
        n1=n1, n2=c2o, n3=c3o, n4=int(wh.shape[1]), n_box=int(wb.shape[1]),
        bias_offs=tuple(int(o) for o in offs[:-1]),
    )
    return {"mats": mats, "meta": meta}


# ----------------------------------------------------------------------------
# Forward wrapper: single pallas_call, whole net VMEM-resident (~50 KiB)
# ----------------------------------------------------------------------------
def make_fused_forward(fused):
    mats = fused["mats"]
    meta = fused["meta"]
    n_box = meta["n_box"]

    kernel = functools.partial(
        _fused_net_kernel,
        n_row_blocks=meta["n_row_blocks"],
        slice_stride=meta["slice_stride"],
        slice_width=meta["slice_width"],
        n1=meta["n1"], n2=meta["n2"], n3=meta["n3"], n4=meta["n4"],
        n_box=n_box, bias_offs=meta["bias_offs"])

    flops_per_row = 2 * (
        meta["n_row_blocks"] * (meta["slice_width"] * meta["n1"]
                                + meta["n1"] * meta["n2"])
        + meta["n2"] * meta["n3"] + meta["n3"] * meta["n4"]
        + meta["n4"] * (n_box + 1))
    weight_bytes = sum(int(np.prod(m.shape)) * m.dtype.itemsize
                       for m in mats.values())

    weights = (mats["w1"], mats["t2"], mats["w3"], mats["wh"], mats["whd"],
               mats["biases"])

    @jax.jit
    def _forward(x, w1, t2, w3, wh, whd, biases):
        b = x.shape[0]
        bp = ((b + 7) // 8) * 8                    # pad M to whole sublanes
        # (hi, ci, wi) flatten: each conv1 output row reads one contiguous
        # lane band of the flattened input (tiny XLA transpose, ~8 KiB).
        xp = jnp.transpose(x, (0, 2, 1, 3)).reshape(b, -1).astype(jnp.bfloat16)
        xp = jnp.pad(xp, ((0, bp - b), (0, 0)))

        vmem = pl.BlockSpec(memory_space=pltpu.MemorySpace.VMEM)
        out_box, out_logit = pl.pallas_call(
            kernel,
            out_shape=(jax.ShapeDtypeStruct((bp, n_box), jnp.float32),
                       jax.ShapeDtypeStruct((bp, 1), jnp.float32)),
            in_specs=[vmem] * 7,
            out_specs=(vmem, vmem),
            cost_estimate=pl.CostEstimate(
                flops=bp * flops_per_row,
                transcendentals=bp,
                bytes_accessed=(weight_bytes
                                + xp.size * xp.dtype.itemsize
                                + 4 * bp * (n_box + 1))),
        )(xp, w1, t2, w3, wh, whd, biases)
        return out_box[:b], out_logit[:b]

    return lambda x: _forward(x, *weights)


# ----------------------------------------------------------------------------
# Parameter init (deterministic, PyTorch-default-style uniform)
# ----------------------------------------------------------------------------
def _init_linear(key, fan_in, fan_out):
    kw, kb = jax.random.split(key)
    bound = 1.0 / math.sqrt(fan_in)
    w = jax.random.uniform(kw, (fan_in, fan_out), jnp.float32, -bound, bound)
    b = jax.random.uniform(kb, (fan_out,), jnp.float32, -bound, bound)
    return w, b


def _init_conv(key, c_in, c_out, k):
    kw, kb = jax.random.split(key)
    fan_in = c_in * k * k
    bound = 1.0 / math.sqrt(fan_in)
    w = jax.random.uniform(kw, (c_out, c_in, k, k), jnp.float32, -bound, bound)
    b = jax.random.uniform(kb, (c_out,), jnp.float32, -bound, bound)
    return w, b


def make_params(key, n_feature, n_hidden, n_output, n_c):
    keys = jax.random.split(key, 6)
    return {
        "conv1": _init_conv(keys[0], n_c, 8, 5),
        "conv2": _init_conv(keys[1], 8, 16, 5),
        "conv3": _init_conv(keys[2], 16, 8, 1),
        "hidden": _init_linear(keys[3], n_feature, n_hidden),
        "box": _init_linear(keys[4], n_hidden, n_output - 1),
        "logit": _init_linear(keys[5], n_hidden, 1),
    }


# ----------------------------------------------------------------------------
# Plain-JAX reference of the original module (for correctness checking only)
# ----------------------------------------------------------------------------
def net_forward_reference(params, x):
    def conv_relu(inp, w, b, stride):
        y = jax.lax.conv_general_dilated(
            inp, w, window_strides=(stride, stride), padding="VALID",
            dimension_numbers=("NCHW", "OIHW", "NCHW"))
        return jnp.maximum(y + b[None, :, None, None], 0.0)

    feat = conv_relu(x, *params["conv1"], 2)
    feat = conv_relu(feat, *params["conv2"], 2)
    feat = conv_relu(feat, *params["conv3"], 1)
    feat = feat.reshape(feat.shape[0], -1)
    h = jnp.maximum(feat @ params["hidden"][0] + params["hidden"][1], 0.0)
    out_box = jnp.maximum(h @ params["box"][0] + params["box"][1], 0.0)
    out_logit = jax.nn.sigmoid(h @ params["logit"][0] + params["logit"][1])
    return out_box, out_logit


if __name__ == "__main__":
    # Shapes consistent with the module:
    #   input (B=2, n_c=4, 16, 16)
    #   conv1 (k5,s2): 16 -> 6 ; conv2 (k5,s2): 6 -> 1 ; conv3 (k1,s1): 1 -> 1
    #   => flattened feature size n_feature = 8 * 1 * 1 = 8
    B, n_c, H, W = 2, 4, 16, 16
    n_feature, n_hidden, n_output = 8, 32, 5

    key = jax.random.PRNGKey(0)
    k_params, k_x = jax.random.split(key)
    params = make_params(k_params, n_feature, n_hidden, n_output, n_c)
    x = jax.random.normal(k_x, (B, n_c, H, W), jnp.float32)

    fused = prepare_fused_params(params, n_c, H, W)      # one-time host folding
    forward = make_fused_forward(fused)

    out_box, out_logit = forward(x)
    jax.block_until_ready((out_box, out_logit))

    # Correctness vs. a plain-JAX f32 implementation of the original module.
    # Tolerance reflects bf16 weight storage (accumulation is f32).
    ref_box, ref_logit = net_forward_reference(params, x)
    assert out_box.shape == (B, n_output - 1)
    assert out_logit.shape == (B, 1)
    assert bool(jnp.allclose(out_box, ref_box, rtol=2e-2, atol=2e-2))
    assert bool(jnp.allclose(out_logit, ref_logit, rtol=2e-2, atol=2e-2))
    assert bool(jnp.all(out_box >= 0.0))
    assert bool(jnp.all((out_logit > 0.0) & (out_logit < 1.0)))
    print("KERNEL_OK")
</pallas_src>

<mosaic_0001>
module attributes {stable_mosaic.version = 11 : i64} {
  func.func @_fused_net_kernel(%arg0: memref<8x1024xbf16, #tpu.memory_space<vmem>>, %arg1: memref<320x48xbf16, #tpu.memory_space<vmem>>, %arg2: memref<6x48x16xbf16, #tpu.memory_space<vmem>>, %arg3: memref<16x8xbf16, #tpu.memory_space<vmem>>, %arg4: memref<8x32xbf16, #tpu.memory_space<vmem>>, %arg5: memref<32x5xbf16, #tpu.memory_space<vmem>>, %arg6: memref<1x128xf32, #tpu.memory_space<vmem>>, %arg7: memref<8x4xf32, #tpu.memory_space<vmem>>, %arg8: memref<8x1xf32, #tpu.memory_space<vmem>>) attributes {dimension_semantics = [], scalar_prefetch = 0 : i64, scratch_operands = 0 : i64, tpu.core_type = #tpu.core_type<tc>} {
    %c0 = arith.constant 0 : index
    %c0_0 = arith.constant 0 : index
    %0 = vector.load %arg6[%c0, %c0_0] : memref<1x128xf32, #tpu.memory_space<vmem>>, vector<1x48xf32>
    %cst = arith.constant 0.000000e+00 : f32
    %1 = vector.broadcast %cst : f32 to vector<8x16xf32>
    %c0_1 = arith.constant 0 : index
    %c0_2 = arith.constant 0 : index
    %2 = vector.load %arg0[%c0_1, %c0_2] : memref<8x1024xbf16, #tpu.memory_space<vmem>>, vector<8x320xbf16>
    %c0_3 = arith.constant 0 : index
    %c0_4 = arith.constant 0 : index
    %3 = vector.load %arg1[%c0_3, %c0_4] : memref<320x48xbf16, #tpu.memory_space<vmem>>, vector<320x48xbf16>
    %cst_5 = arith.constant dense<0.000000e+00> : vector<8x48xf32>
    %4 = tpu.matmul %2, %3, %cst_5 {dimension_numbers = #tpu.dot_dimension_numbers<[1], [0], [0], [1], [0, 0, 1, 1], [], []>} : vector<8x320xbf16>, vector<320x48xbf16>, vector<8x48xf32> -> vector<8x48xf32>
    %5 = vector.broadcast %0 : vector<1x48xf32> to vector<8x48xf32>
    %6 = arith.addf %4, %5 : vector<8x48xf32>
    %cst_6 = arith.constant 0.000000e+00 : f32
    %7 = vector.broadcast %cst_6 : f32 to vector<8x48xf32>
    %8 = arith.maximumf %6, %7 : vector<8x48xf32>
    %c0_7 = arith.constant 0 : index
    %c0_8 = arith.constant 0 : index
    %c0_9 = arith.constant 0 : index
    %9 = vector.load %arg2[%c0_7, %c0_8, %c0_9] : memref<6x48x16xbf16, #tpu.memory_space<vmem>>, vector<1x48x16xbf16>
    %10 = vector.shape_cast %9 : vector<1x48x16xbf16> to vector<48x16xbf16>
    %11 = arith.truncf %8 : vector<8x48xf32> to vector<8x48xbf16>
    %cst_10 = arith.constant dense<0.000000e+00> : vector<8x16xf32>
    %12 = tpu.matmul %11, %10, %cst_10 {dimension_numbers = #tpu.dot_dimension_numbers<[1], [0], [0], [1], [0, 0, 1, 1], [], []>} : vector<8x48xbf16>, vector<48x16xbf16>, vector<8x16xf32> -> vector<8x16xf32>
    %13 = arith.addf %1, %12 : vector<8x16xf32>
    %c0_11 = arith.constant 0 : index
    %c128 = arith.constant 128 : index
    %14 = vector.load %arg0[%c0_11, %c128] : memref<8x1024xbf16, #tpu.memory_space<vmem>>, vector<8x320xbf16>
    %c0_12 = arith.constant 0 : index
    %c0_13 = arith.constant 0 : index
    %15 = vector.load %arg1[%c0_12, %c0_13] : memref<320x48xbf16, #tpu.memory_space<vmem>>, vector<320x48xbf16>
    %cst_14 = arith.constant dense<0.000000e+00> : vector<8x48xf32>
    %16 = tpu.matmul %14, %15, %cst_14 {dimension_numbers = #tpu.dot_dimension_numbers<[1], [0], [0], [1], [0, 0, 1, 1], [], []>} : vector<8x320xbf16>, vector<320x48xbf16>, vector<8x48xf32> -> vector<8x48xf32>
    %17 = vector.broadcast %0 : vector<1x48xf32> to vector<8x48xf32>
    %18 = arith.addf %16, %17 : vector<8x48xf32>
    %cst_15 = arith.constant 0.000000e+00 : f32
    %19 = vector.broadcast %cst_15 : f32 to vector<8x48xf32>
    %20 = arith.maximumf %18, %19 : vector<8x48xf32>
    %c1 = arith.constant 1 : index
    %c0_16 = arith.constant 0 : index
    %c0_17 = arith.constant 0 : index
    %21 = vector.load %arg2[%c1, %c0_16, %c0_17] : memref<6x48x16xbf16, #tpu.memory_space<vmem>>, vector<1x48x16xbf16>
    %22 = vector.shape_cast %21 : vector<1x48x16xbf16> to vector<48x16xbf16>
    %23 = arith.truncf %20 : vector<8x48xf32> to vector<8x48xbf16>
    %cst_18 = arith.constant dense<0.000000e+00> : vector<8x16xf32>
    %24 = tpu.matmul %23, %22, %cst_18 {dimension_numbers = #tpu.dot_dimension_numbers<[1], [0], [0], [1], [0, 0, 1, 1], [], []>} : vector<8x48xbf16>, vector<48x16xbf16>, vector<8x16xf32> -> vector<8x16xf32>
    %25 = arith.addf %13, %24 : vector<8x16xf32>
    %c0_19 = arith.constant 0 : index
    %c256 = arith.constant 256 : index
    %26 = vector.load %arg0[%c0_19, %c256] : memref<8x1024xbf16, #tpu.memory_space<vmem>>, vector<8x320xbf16>
    %c0_20 = arith.constant 0 : index
    %c0_21 = arith.constant 0 : index
    %27 = vector.load %arg1[%c0_20, %c0_21] : memref<320x48xbf16, #tpu.memory_space<vmem>>, vector<320x48xbf16>
    %cst_22 = arith.constant dense<0.000000e+00> : vector<8x48xf32>
    %28 = tpu.matmul %26, %27, %cst_22 {dimension_numbers = #tpu.dot_dimension_numbers<[1], [0], [0], [1], [0, 0, 1, 1], [], []>} : vector<8x320xbf16>, vector<320x48xbf16>, vector<8x48xf32> -> vector<8x48xf32>
    %29 = vector.broadcast %0 : vector<1x48xf32> to vector<8x48xf32>
    %30 = arith.addf %28, %29 : vector<8x48xf32>
    %cst_23 = arith.constant 0.000000e+00 : f32
    %31 = vector.broadcast %cst_23 : f32 to vector<8x48xf32>
    %32 = arith.maximumf %30, %31 : vector<8x48xf32>
    %c2 = arith.constant 2 : index
    %c0_24 = arith.constant 0 : index
    %c0_25 = arith.constant 0 : index
    %33 = vector.load %arg2[%c2, %c0_24, %c0_25] : memref<6x48x16xbf16, #tpu.memory_space<vmem>>, vector<1x48x16xbf16>
    %34 = vector.shape_cast %33 : vector<1x48x16xbf16> to vector<48x16xbf16>
    %35 = arith.truncf %32 : vector<8x48xf32> to vector<8x48xbf16>
    %cst_26 = arith.constant dense<0.000000e+00> : vector<8x16xf32>
    %36 = tpu.matmul %35, %34, %cst_26 {dimension_numbers = #tpu.dot_dimension_numbers<[1], [0], [0], [1], [0, 0, 1, 1], [], []>} : vector<8x48xbf16>, vector<48x16xbf16>, vector<8x16xf32> -> vector<8x16xf32>
    %37 = arith.addf %25, %36 : vector<8x16xf32>
    %c0_27 = arith.constant 0 : index
    %c384 = arith.constant 384 : index
    %38 = vector.load %arg0[%c0_27, %c384] : memref<8x1024xbf16, #tpu.memory_space<vmem>>, vector<8x320xbf16>
    %c0_28 = arith.constant 0 : index
    %c0_29 = arith.constant 0 : index
    %39 = vector.load %arg1[%c0_28, %c0_29] : memref<320x48xbf16, #tpu.memory_space<vmem>>, vector<320x48xbf16>
    %cst_30 = arith.constant dense<0.000000e+00> : vector<8x48xf32>
    %40 = tpu.matmul %38, %39, %cst_30 {dimension_numbers = #tpu.dot_dimension_numbers<[1], [0], [0], [1], [0, 0, 1, 1], [], []>} : vector<8x320xbf16>, vector<320x48xbf16>, vector<8x48xf32> -> vector<8x48xf32>
    %41 = vector.broadcast %0 : vector<1x48xf32> to vector<8x48xf32>
    %42 = arith.addf %40, %41 : vector<8x48xf32>
    %cst_31 = arith.constant 0.000000e+00 : f32
    %43 = vector.broadcast %cst_31 : f32 to vector<8x48xf32>
    %44 = arith.maximumf %42, %43 : vector<8x48xf32>
    %c3 = arith.constant 3 : index
    %c0_32 = arith.constant 0 : index
    %c0_33 = arith.constant 0 : index
    %45 = vector.load %arg2[%c3, %c0_32, %c0_33] : memref<6x48x16xbf16, #tpu.memory_space<vmem>>, vector<1x48x16xbf16>
    %46 = vector.shape_cast %45 : vector<1x48x16xbf16> to vector<48x16xbf16>
    %47 = arith.truncf %44 : vector<8x48xf32> to vector<8x48xbf16>
    %cst_34 = arith.constant dense<0.000000e+00> : vector<8x16xf32>
    %48 = tpu.matmul %47, %46, %cst_34 {dimension_numbers = #tpu.dot_dimension_numbers<[1], [0], [0], [1], [0, 0, 1, 1], [], []>} : vector<8x48xbf16>, vector<48x16xbf16>, vector<8x16xf32> -> vector<8x16xf32>
    %49 = arith.addf %37, %48 : vector<8x16xf32>
    %c0_35 = arith.constant 0 : index
    %c512 = arith.constant 512 : index
    %50 = vector.load %arg0[%c0_35, %c512] : memref<8x1024xbf16, #tpu.memory_space<vmem>>, vector<8x320xbf16>
    %c0_36 = arith.constant 0 : index
    %c0_37 = arith.constant 0 : index
    %51 = vector.load %arg1[%c0_36, %c0_37] : memref<320x48xbf16, #tpu.memory_space<vmem>>, vector<320x48xbf16>
    %cst_38 = arith.constant dense<0.000000e+00> : vector<8x48xf32>
    %52 = tpu.matmul %50, %51, %cst_38 {dimension_numbers = #tpu.dot_dimension_numbers<[1], [0], [0], [1], [0, 0, 1, 1], [], []>} : vector<8x320xbf16>, vector<320x48xbf16>, vector<8x48xf32> -> vector<8x48xf32>
    %53 = vector.broadcast %0 : vector<1x48xf32> to vector<8x48xf32>
    %54 = arith.addf %52, %53 : vector<8x48xf32>
    %cst_39 = arith.constant 0.000000e+00 : f32
    %55 = vector.broadcast %cst_39 : f32 to vector<8x48xf32>
    %56 = arith.maximumf %54, %55 : vector<8x48xf32>
    %c4 = arith.constant 4 : index
    %c0_40 = arith.constant 0 : index
    %c0_41 = arith.constant 0 : index
    %57 = vector.load %arg2[%c4, %c0_40, %c0_41] : memref<6x48x16xbf16, #tpu.memory_space<vmem>>, vector<1x48x16xbf16>
    %58 = vector.shape_cast %57 : vector<1x48x16xbf16> to vector<48x16xbf16>
    %59 = arith.truncf %56 : vector<8x48xf32> to vector<8x48xbf16>
    %cst_42 = arith.constant dense<0.000000e+00> : vector<8x16xf32>
    %60 = tpu.matmul %59, %58, %cst_42 {dimension_numbers = #tpu.dot_dimension_numbers<[1], [0], [0], [1], [0, 0, 1, 1], [], []>} : vector<8x48xbf16>, vector<48x16xbf16>, vector<8x16xf32> -> vector<8x16xf32>
    %61 = arith.addf %49, %60 : vector<8x16xf32>
    %c0_43 = arith.constant 0 : index
    %c640 = arith.constant 640 : index
    %62 = vector.load %arg0[%c0_43, %c640] : memref<8x1024xbf16, #tpu.memory_space<vmem>>, vector<8x320xbf16>
    %c0_44 = arith.constant 0 : index
    %c0_45 = arith.constant 0 : index
    %63 = vector.load %arg1[%c0_44, %c0_45] : memref<320x48xbf16, #tpu.memory_space<vmem>>, vector<320x48xbf16>
    %cst_46 = arith.constant dense<0.000000e+00> : vector<8x48xf32>
    %64 = tpu.matmul %62, %63, %cst_46 {dimension_numbers = #tpu.dot_dimension_numbers<[1], [0], [0], [1], [0, 0, 1, 1], [], []>} : vector<8x320xbf16>, vector<320x48xbf16>, vector<8x48xf32> -> vector<8x48xf32>
    %65 = vector.broadcast %0 : vector<1x48xf32> to vector<8x48xf32>
    %66 = arith.addf %64, %65 : vector<8x48xf32>
    %cst_47 = arith.constant 0.000000e+00 : f32
    %67 = vector.broadcast %cst_47 : f32 to vector<8x48xf32>
    %68 = arith.maximumf %66, %67 : vector<8x48xf32>
    %c5 = arith.constant 5 : index
    %c0_48 = arith.constant 0 : index
    %c0_49 = arith.constant 0 : index
    %69 = vector.load %arg2[%c5, %c0_48, %c0_49] : memref<6x48x16xbf16, #tpu.memory_space<vmem>>, vector<1x48x16xbf16>
    %70 = vector.shape_cast %69 : vector<1x48x16xbf16> to vector<48x16xbf16>
    %71 = arith.truncf %68 : vector<8x48xf32> to vector<8x48xbf16>
    %cst_50 = arith.constant dense<0.000000e+00> : vector<8x16xf32>
    %72 = tpu.matmul %71, %70, %cst_50 {dimension_numbers = #tpu.dot_dimension_numbers<[1], [0], [0], [1], [0, 0, 1, 1], [], []>} : vector<8x48xbf16>, vector<48x16xbf16>, vector<8x16xf32> -> vector<8x16xf32>
    %73 = arith.addf %61, %72 : vector<8x16xf32>
    %c0_51 = arith.constant 0 : index
    %c48 = arith.constant 48 : index
    %74 = vector.load %arg6[%c0_51, %c48] : memref<1x128xf32, #tpu.memory_space<vmem>>, vector<1x16xf32>
    %75 = vector.broadcast %74 : vector<1x16xf32> to vector<8x16xf32>
    %76 = arith.addf %73, %75 : vector<8x16xf32>
    %cst_52 = arith.constant 0.000000e+00 : f32
    %77 = vector.broadcast %cst_52 : f32 to vector<8x16xf32>
    %78 = arith.maximumf %76, %77 : vector<8x16xf32>
    %c0_53 = arith.constant 0 : index
    %c0_54 = arith.constant 0 : index
    %79 = vector.load %arg3[%c0_53, %c0_54] : memref<16x8xbf16, #tpu.memory_space<vmem>>, vector<16x8xbf16>
    %80 = arith.truncf %78 : vector<8x16xf32> to vector<8x16xbf16>
    %cst_55 = arith.constant dense<0.000000e+00> : vector<8x8xf32>
    %81 = tpu.matmul %80, %79, %cst_55 {dimension_numbers = #tpu.dot_dimension_numbers<[1], [0], [0], [1], [0, 0, 1, 1], [], []>} : vector<8x16xbf16>, vector<16x8xbf16>, vector<8x8xf32> -> vector<8x8xf32>
    %c0_56 = arith.constant 0 : index
    %c64 = arith.constant 64 : index
    %82 = vector.load %arg6[%c0_56, %c64] : memref<1x128xf32, #tpu.memory_space<vmem>>, vector<1x8xf32>
    %83 = vector.broadcast %82 : vector<1x8xf32> to vector<8x8xf32>
    %84 = arith.addf %81, %83 : vector<8x8xf32>
    %cst_57 = arith.constant 0.000000e+00 : f32
    %85 = vector.broadcast %cst_57 : f32 to vector<8x8xf32>
    %86 = arith.maximumf %84, %85 : vector<8x8xf32>
    %c0_58 = arith.constant 0 : index
    %c0_59 = arith.constant 0 : index
    %87 = vector.load %arg4[%c0_58, %c0_59] : memref<8x32xbf16, #tpu.memory_space<vmem>>, vector<8x32xbf16>
    %88 = arith.truncf %86 : vector<8x8xf32> to vector<8x8xbf16>
    %cst_60 = arith.constant dense<0.000000e+00> : vector<8x32xf32>
    %89 = tpu.matmul %88, %87, %cst_60 {dimension_numbers = #tpu.dot_dimension_numbers<[1], [0], [0], [1], [0, 0, 1, 1], [], []>} : vector<8x8xbf16>, vector<8x32xbf16>, vector<8x32xf32> -> vector<8x32xf32>
    %c0_61 = arith.constant 0 : index
    %c72 = arith.constant 72 : index
    %90 = vector.load %arg6[%c0_61, %c72] : memref<1x128xf32, #tpu.memory_space<vmem>>, vector<1x32xf32>
    %91 = vector.broadcast %90 : vector<1x32xf32> to vector<8x32xf32>
    %92 = arith.addf %89, %91 : vector<8x32xf32>
    %cst_62 = arith.constant 0.000000e+00 : f32
    %93 = vector.broadcast %cst_62 : f32 to vector<8x32xf32>
    %94 = arith.maximumf %92, %93 : vector<8x32xf32>
    %c0_63 = arith.constant 0 : index
    %c0_64 = arith.constant 0 : index
    %95 = vector.load %arg5[%c0_63, %c0_64] : memref<32x5xbf16, #tpu.memory_space<vmem>>, vector<32x5xbf16>
    %96 = arith.truncf %94 : vector<8x32xf32> to vector<8x32xbf16>
    %cst_65 = arith.constant dense<0.000000e+00> : vector<8x5xf32>
    %97 = tpu.matmul %96, %95, %cst_65 {dimension_numbers = #tpu.dot_dimension_numbers<[1], [0], [0], [1], [0, 0, 1, 1], [], []>} : vector<8x32xbf16>, vector<32x5xbf16>, vector<8x5xf32> -> vector<8x5xf32>
    %c0_66 = arith.constant 0 : index
    %c104 = arith.constant 104 : index
    %98 = vector.load %arg6[%c0_66, %c104] : memref<1x128xf32, #tpu.memory_space<vmem>>, vector<1x5xf32>
    %99 = vector.broadcast %98 : vector<1x5xf32> to vector<8x5xf32>
    %100 = arith.addf %97, %99 : vector<8x5xf32>
    %101 = vector.extract_strided_slice %100 {offsets = [0, 0], sizes = [8, 4], strides = [1, 1]} : vector<8x5xf32> to vector<8x4xf32>
    %cst_67 = arith.constant 0.000000e+00 : f32
    %102 = vector.broadcast %cst_67 : f32 to vector<8x4xf32>
    %103 = arith.maximumf %101, %102 : vector<8x4xf32>
    %c0_68 = arith.constant 0 : index
    %c0_69 = arith.constant 0 : index
    %104 = vector.load %arg7[%c0_68, %c0_69] : memref<8x4xf32, #tpu.memory_space<vmem>>, vector<8x4xf32>
    tpu.vector_store %arg7[%c0_68, %c0_69], %103 {strides = array<i32>} : memref<8x4xf32, #tpu.memory_space<vmem>>, vector<8x4xf32>,
    %105 = vector.extract_strided_slice %100 {offsets = [0, 4], sizes = [8, 1], strides = [1, 1]} : vector<8x5xf32> to vector<8x1xf32>
    %106 = arith.negf %105 : vector<8x1xf32>
    %107 = math.exp %106 : vector<8x1xf32>
    %cst_70 = arith.constant 1.000000e+00 : f32
    %108 = vector.broadcast %cst_70 : f32 to vector<8x1xf32>
    %109 = arith.addf %108, %107 : vector<8x1xf32>
    %110 = arith.divf %108, %109 : vector<8x1xf32>
    %c0_71 = arith.constant 0 : index
    %c0_72 = arith.constant 0 : index
    %111 = vector.load %arg8[%c0_71, %c0_72] : memref<8x1xf32, #tpu.memory_space<vmem>>, vector<8x1xf32>
    tpu.vector_store %arg8[%c0_71, %c0_72], %110 {strides = array<i32>} : memref<8x1xf32, #tpu.memory_space<vmem>>, vector<8x1xf32>,
    return
  }
}

</mosaic_0001>

<bundles_post_ra>
// kernel: _forward.1
= control target key start
LH: loop header
LB: loop body
LE: loop exit
PB: predicated region body
PF: predicated region fallthrough
CT: control target
= control target key end

     0   :  { %v1915_v0 = vmov 0.0   ;;  %vm1916_vm0 = vmmov 0   ;;  %vm208_vm1 = vcmask 523264   ;;  %vm422_vm2 = vcmask 392192   ;;  %s1917_s13 = smov 80   ;;  %s1918_s15 = smov 64   ;;  %s2401_s1 = inlined_call_operand.vmem [shape: bf16[320,48], index: 1, kind: input, shape index: {}]   ;;  %s2402_s0 = inlined_call_operand.vmem [shape: bf16[8,1024], index: 0, kind: input, shape index: {}]   ;;  %s2403_s2 = inlined_call_operand.vmem [shape: bf16[6,48,16], index: 2, kind: input, shape index: {}]   ;;  %s2404_s6 = inlined_call_operand.vmem [shape: f32[1,128], index: 6, kind: input, shape index: {}]   ;;  %s2405_s3 = inlined_call_operand.vmem [shape: bf16[16,8], index: 3, kind: input, shape index: {}]   ;;  %s2406_s4 = inlined_call_operand.vmem [shape: bf16[8,32], index: 4, kind: input, shape index: {}]   ;;  %s2407_s5 = inlined_call_operand.vmem [shape: bf16[32,5], index: 5, kind: input, shape index: {}]   ;;  %s2408_s7 = inlined_call_operand.vmem [shape: f32[8,4], index: 7, kind: output, shape index: {0}]   ;;  %s2409_s8 = inlined_call_operand.vmem [shape: f32[8,1], index: 8, kind: output, shape index: {1}]  }
   0x1   :  { %1693 = vmatprep.subr.bf16.mxu1 %v1915_v0  ;;  %v1971_v1 = vld [vmem:[%s2401_s1 + $0x78] sm:$0xff]   ;;  %1701 = vmatprep.mubr.msk.bf16.mxu1 %vm1916_vm0, %v1915_v0  ;;  %v1990_v4 = vld [vmem:[%s2401_s1 + $0x70] sm:$0xff]   ;;  %v2008_v7 = vld [vmem:[%s2401_s1 + $0x68] sm:$0xff]   ;;  %vm1262_vm3 = vcmask 1043456   ;;  %vm1208_vm4 = vcmask 130048   ;;  %vm1258_vm5 = vcmask 64512  }
   0x2   :  { %v1978_v2 = vld [vmem:[%s2401_s1 + $0x98] sm:$0xff]   ;;  %1500 = vmatprep.subr.bf16.mxu0 %v1971_v1  ;;  %v1997_v5 = vld [vmem:[%s2401_s1 + $0x90] sm:$0xff]   ;;  %v2014_v8 = vld [vmem:[%s2401_s1 + $0x88] sm:$0xff]   ;;  %s1920_s21 = smov 24   ;;  %vm1327_vm6 = vcmask 261120   ;;  %vm1372_vm7 = vcmask 31744  }
   0x3   :  { %v1984_v3 = vld [vmem:[%s2401_s1 + $0x38] sm:$0xff]   ;;  %1694 = vmatpush3.bf16.msra.mxu1 %v1978_v2  ;;  %v2003_v6 = vld [vmem:[%s2401_s1 + $0x30] sm:$0xff]   ;;  %v2021_v9 = vld [vmem:[%s2401_s1 + $0x28] sm:$0xff]   ;;  %s1921_s22 = smov 124   ;;  %vm1384_vm8 = vcmask 7168  }
   0x4   :  { %1501 = vmatpush3.bf16.msra.mxu0 %v1984_v3  ;;  %1695 = vmatprep.subr.bf16.mxu1 %v1915_v0  ;;  %v2027_v10 = vld [vmem:[%s2401_s1 + $0x60] sm:$0xff]   ;;  %v2046_v13 = vld [vmem:[%s2401_s1 + $0x58] sm:$0xff]   ;;  %v1864_v14 = vld [vmem:[%s2402_s0 + $0x8] ss:$0 sps:$4 sm:$0xff]  }
   0x5   :  { %1502 = vmatprep.subr.bf16.mxu0 %v1990_v4  ;;  %v2033_v11 = vld [vmem:[%s2401_s1 + $0x80] sm:$0xff]   ;;  %v2057_v15 = vld [vmem:[%s2401_s1 + $0x18] sm:$0xff]   ;;  %v2063_v16 = vld [vmem:[%s2401_s1 + $0x50] sm:$0xff]  }
   0x6   :  { %v2040_v12 = vld [vmem:[%s2401_s1 + $0x20] sm:$0xff]   ;;  %v2072_v17 = vld [vmem:[%s2401_s1 + $0x10] sm:$0xff]   ;;  %v2081_v19 = vld [vmem:[%s2401_s1 + $0x48] sm:$0xff]  }
   0x7   :  { %1696 = vmatpush3.bf16.msra.mxu1 %v1997_v5  ;;  %v30_v18 = vld [vmem:[%s2402_s0] sm:$0xff]  ;;  %v2092_v23 = vld [vmem:[%s2401_s1 + $0x8] sm:$0xff]   ;;  %v1878_v29 = vld [vmem:[%s2403_s2 + $0x10] sm:$0xff]  }
   0x8   :  { %1503 = vmatpush3.bf16.msra.mxu0 %v2003_v6  ;;  %1697 = vmatprep.subr.bf16.mxu1 %v1915_v0  ;;  %v1396_v20 = vcombine.high %v30_v18, %v30_v18  ;;  %v300_v21 = vld [vmem:[%s2402_s0 + $0x4] sm:$0xff]  ;;  %v1395_v26 = vcombine.low %v30_v18, %v30_v18  ;;  %v1877_v28 = vld [vmem:[%s2402_s0 + $0xc] ss:$0 sps:$4 sm:$0xff]   ;;  %v1883_v34 = vld [vmem:[%s2403_s2 + $0x18] sm:$0xff]  }
   0x9   :  { %1504 = vmatprep.subr.bf16.mxu0 %v2008_v7  ;;  %v1420_v22 = vcombine.high %v300_v21, %v300_v21  ;;  %v2098_v24 = vld [vmem:[%s2401_s1 + $0x40] sm:$0xff]   ;;  %v1419_v27 = vcombine.low %v300_v21, %v300_v21  ;;  %v1879_v30 = vld [vmem:[%s2403_s2 + $0x8] sm:$0xff]   ;;  %v1888_v21 = vld [vmem:[%s2403_s2 + $0x38] sm:$0xff]  }
   0xa   :  { %244 = vmatprep.mubr.bf16.mxu0 %v1396_v20  ;;  %v2106_v25 = vld [vmem:[%s2401_s1] sm:$0xff]   ;;  %v1881_v32 = vld [vmem:[%s2403_s2 + $0x28] sm:$0xff]  }
   0xb   :  { %1698 = vmatpush3.bf16.msra.mxu1 %v2014_v8  ;;  %v1880_v31 = vld [vmem:[%s2403_s2] sm:$0xff]   ;;  %v527_v60 = vld [vmem:[%s2402_s0 + $0x8] sm:$0xff] }
   0xc   :  { %1505 = vmatpush3.bf16.msra.mxu0 %v2021_v9  ;;  %1699 = vmatprep.subr.bf16.mxu1 %v1915_v0  ;;  %v1882_v33 = vld [vmem:[%s2403_s2 + $0x20] sm:$0xff]   ;;  %v1438_v62 = vcombine.high %v527_v60, %v527_v60  ;;  %v1437_v18 = vcombine.low %v527_v60, %v527_v60  ;;  %v1898_v60 = vld [vmem:[%s2402_s0 + $0x18] ss:$0 sps:$4 sm:$0xff]  }
   0xd   :  { %1506 = vmatprep.subr.bf16.mxu0 %v2027_v10  ;;  %v2166_v40 = vld [vmem:[%s2404_s6] ss:$0 sm:$0xff] }
   0xe   :  { %v1887_v20 = vld [vmem:[%s2403_s2 + $0x40] sm:$0xff]   ;;  %1191 = vrot.lane.b32.xlu0 %v2166_v40, %s1917_s13 }
   0xf   :  { %1700 = vmatpush3.bf16.msra.mxu1 %v2033_v11 }
  0x10   :  { %1507 = vmatpush3.bf16.msra.mxu0 %v2040_v12  ;;  %1527 = vmatprep.subr.bf16.mxu1 %v1971_v1 }
  0x11   :  { %1508 = vmatprep.subr.bf16.mxu0 %v2046_v13 }
  0x12   :  { %1702 = vmatmul.mubr.msk.bf16.vlgmr.msra.gmra.mxu1 %vm208_vm1, %v1864_v14  ;;  %v1886_v14 = vld [vmem:[%s2402_s0 + $0x10] ss:$0 sps:$4 sm:$0xff]   ;;  %1205 = vrot.lane.b32.xlu0 %v2166_v40, %s1918_s15 }
  0x13   :  { %1528 = vmatpush3.bf16.msra.mxu1 %v1984_v3  ;;  %347 = vmatprep.mubr.bf16.mxu1 %v1420_v22  ;;  %v1889_v22 = vld [vmem:[%s2403_s2 + $0x30] sm:$0xff]  }
  0x14   :  { %1509 = vmatpush3.bf16.msra.mxu0 %v2057_v15  ;;  %1529 = vmatprep.subr.bf16.mxu1 %v1990_v4 }
  0x15   :  { %1510 = vmatprep.subr.bf16.mxu0 %v2063_v16 }
  0x17   :  { %1530 = vmatpush3.bf16.msra.mxu1 %v2003_v6 }
  0x18   :  { %1511 = vmatpush3.bf16.msra.mxu0 %v2072_v17  ;;  %1531 = vmatprep.subr.bf16.mxu1 %v2008_v7 }
  0x19   :  { %1512 = vmatprep.subr.bf16.mxu0 %v2081_v19 }
  0x1b   :  { %1532 = vmatpush3.bf16.msra.mxu1 %v2021_v9 }
  0x1c   :  { %1513 = vmatpush3.bf16.msra.mxu0 %v2092_v23  ;;  %1533 = vmatprep.subr.bf16.mxu1 %v2027_v10 }
  0x1d   :  { %1514 = vmatprep.subr.bf16.mxu0 %v2098_v24 }
  0x1f   :  { %1534 = vmatpush3.bf16.msra.mxu1 %v2040_v12 }
  0x20   :  { %1515 = vmatpush3.bf16.msra.mxu0 %v2106_v25  ;;  %1535 = vmatprep.subr.bf16.mxu1 %v2046_v13 }
  0x21   :  { %1705 = vmatprep.subr.bf16.mxu0 %v1915_v0 }
  0x23   :  { %245 = vmatmul.mubr.bf16.vlgmr.msra.gmra.mxu0 %v1395_v26  ;;  %1536 = vmatpush3.bf16.msra.mxu1 %v2057_v15  ;;  %v1892_v26 = vld [vmem:[%s2402_s0 + $0x14] ss:$0 sps:$4 sm:$0xff]  }
  0x24   :  { %1706 = vmatpush3.bf16.msra.mxu0 %v1978_v2  ;;  %1537 = vmatprep.subr.bf16.mxu1 %v2063_v16 }
  0x25   :  { %1707 = vmatprep.subr.bf16.mxu0 %v1915_v0  ;;  %1713 = vmatprep.mubr.msk.bf16.mxu0 %vm1916_vm0, %v1915_v0 }
  0x27   :  { %1538 = vmatpush3.bf16.msra.mxu1 %v2072_v17 }
  0x28   :  { %1708 = vmatpush3.bf16.msra.mxu0 %v1997_v5  ;;  %1539 = vmatprep.subr.bf16.mxu1 %v2081_v19 }
  0x29   :  { %1709 = vmatprep.subr.bf16.mxu0 %v1915_v0 }
  0x2b   :  { %1540 = vmatpush3.bf16.msra.mxu1 %v2092_v23 }
  0x2c   :  { %1710 = vmatpush3.bf16.msra.mxu0 %v2014_v8  ;;  %1541 = vmatprep.subr.bf16.mxu1 %v2098_v24 }
  0x2d   :  { %1711 = vmatprep.subr.bf16.mxu0 %v1915_v0 }
  0x2f   :  { %1542 = vmatpush3.bf16.msra.mxu1 %v2106_v25 }
  0x30   :  { %1712 = vmatpush3.bf16.msra.mxu0 %v2033_v11  ;;  %1727 = vmatprep.subr.bf16.mxu1 %v1915_v0 }
  0x31   :  { %1717 = vmatprep.subr.bf16.mxu0 %v1915_v0 }
  0x32   :  { %348 = vmatmul.mubr.bf16.vlgmr.msra.gmra.mxu1 %v1419_v27 }
  0x33   :  { %1714 = vmatmul.mubr.msk.bf16.vlgmr.msra.gmra.mxu0 %vm208_vm1, %v1877_v28  ;;  %1733 = vmatprep.mubr.msk.bf16.mxu1 %vm1916_vm0, %v1915_v0 }
  0x34   :  { %1723 = vmatprep.mubr.msk.bf16.mxu0 %vm1916_vm0, %v1915_v0  ;;  %1728 = vmatpush3.bf16.msra.mxu1 %v1878_v29 }
  0x35   :  { %1729 = vmatprep.subr.bf16.mxu1 %v1915_v0  ;;  %1718 = vmatpush3.bf16.msra.mxu0 %v1881_v32 }
  0x36   :  { %1719 = vmatprep.subr.bf16.mxu0 %v1915_v0 }
  0x38   :  { %1730 = vmatpush3.bf16.msra.mxu1 %v1879_v30 }
  0x39   :  { %1731 = vmatprep.subr.bf16.mxu1 %v1915_v0  ;;  %1720 = vmatpush3.bf16.msra.mxu0 %v1882_v33 }
  0x3a   :  { %1721 = vmatprep.subr.bf16.mxu0 %v1915_v0 }
  0x3c   :  { %1732 = vmatpush3.bf16.msra.mxu1 %v1880_v31 }
  0x3d   :  { %1737 = vmatprep.subr.bf16.mxu1 %v1915_v0  ;;  %1722 = vmatpush3.bf16.msra.mxu0 %v1883_v34 }
  0x3e   :  { %1562 = vmatprep.subr.bf16.mxu0 %v1971_v1 }
  0xd2   :  { %v286_v35 = vpop.f32.mrf.mxu1 }
  0xd4   :  { %v1703_v36 = vpop.f32.mrf.mxu1 }
  0xd6   :  { %v289_v37 = vpop.f32.mrf.mxu1 }
  0xd8   :  { %v1704_v38 = vpop.f32.mrf.mxu1 }
  0xe3   :  { %v1516_v39 = vpop.f32.mrf.mxu0 }
  0xe5   :  { %v1517_v41 = vpop.f32.mrf.mxu0 }
  0xe6   :  { %v1518_v42 = vadd.f32 %v1517_v41, %v1516_v39 }
  0xe7   :  { %v1519_v43 = vpop.f32.mrf.mxu0 }
  0xe8   :  { %v247_v44 = vadd.f32 %v1518_v42, %v2166_v40 }
  0xe9   :  { %v1520_v45 = vpop.f32.mrf.mxu0 }
  0xea   :  { %v287_v46 = vadd.f32 %v286_v35, %v247_v44 }
  0xec   :  { %v292_v47 = vmax.f32 %v287_v46, 0.0 }
  0xee   :  { %v299_v48 = vpack.c.bf16 %v292_v47, %v292_v47 }
  0xf0   :  { %1734 = vmatmul.mubr.msk.bf16.vlgmr.msra.gmra.mxu1 %vm422_vm2, %v299_v48  ;;  %v693_v48 = vld [vmem:[%s2402_s0 + $0xc] sm:$0xff] }
  0xf1   :  { %1738 = vmatpush3.bf16.msra.mxu1 %v1978_v2  ;;  %1745 = vmatprep.mubr.msk.bf16.mxu1 %vm1916_vm0, %v1915_v0 }
  0xf2   :  { %v1543_v49 = vpop.f32.mrf.mxu1  ;;  %1739 = vmatprep.subr.bf16.mxu1 %v1915_v0 }
  0xf3   :  { %v389_v50 = vpop.f32.mrf.mxu0 }
  0xf4   :  { %v1544_v51 = vpop.f32.mrf.mxu1 }
  0xf5   :  { %v1545_v52 = vadd.f32 %v1544_v51, %v1543_v49  ;;  %v1715_v53 = vpop.f32.mrf.mxu0  ;;  %1740 = vmatpush3.bf16.msra.mxu1 %v1997_v5 }
  0xf6   :  { %v1546_v54 = vpop.f32.mrf.mxu1  ;;  %1741 = vmatprep.subr.bf16.mxu1 %v1915_v0  ;;  %v1893_v53 = vld [vmem:[%s2403_s2 + $0x58] sm:$0xff]  }
  0xf7   :  { %v350_v55 = vadd.f32 %v1545_v52, %v2166_v40  ;;  %v392_v56 = vpop.f32.mrf.mxu0  ;;  %v1451_v52 = vcombine.low %v693_v48, %v693_v48 }
  0xf8   :  { %v1547_v57 = vpop.f32.mrf.mxu1  ;;  %v1894_v56 = vld [vmem:[%s2403_s2 + $0x50] sm:$0xff]  }
  0xf9   :  { %v390_v58 = vadd.f32 %v389_v50, %v350_v55  ;;  %v1716_v59 = vpop.f32.mrf.mxu0  ;;  %1742 = vmatpush3.bf16.msra.mxu1 %v2014_v8  ;;  %v1452_v50 = vcombine.high %v693_v48, %v693_v48 }
  0xfa   :  { %1743 = vmatprep.subr.bf16.mxu1 %v1915_v0  ;;  %v1895_v59 = vld [vmem:[%s2403_s2 + $0x48] sm:$0xff]  }
  0xfb   :  { %v395_v61 = vmax.f32 %v390_v58, 0.0 }
  0xfd   :  { %v403_v63 = vpack.c.bf16 %v395_v61, %v395_v61  ;;  %1744 = vmatpush3.bf16.msra.mxu1 %v2033_v11 }
  0xfe   :  { %1749 = vmatprep.subr.bf16.mxu1 %v1915_v0 }
  0xff   :  { %1724 = vmatmul.mubr.msk.bf16.vlgmr.msra.gmra.mxu0 %vm422_vm2, %v403_v63 }
 0x100   :  { %1563 = vmatpush3.bf16.msra.mxu0 %v1984_v3  ;;  %574 = vmatprep.mubr.bf16.mxu0 %v1438_v62 }
 0x101   :  { %1564 = vmatprep.subr.bf16.mxu0 %v1990_v4  ;;  %1746 = vmatmul.mubr.msk.bf16.vlgmr.msra.gmra.mxu1 %vm208_vm1, %v1886_v14 }
 0x102   :  { %1755 = vmatprep.mubr.msk.bf16.mxu1 %vm1916_vm0, %v1915_v0  ;;  %1750 = vmatpush3.bf16.msra.mxu1 %v1887_v20 }
 0x103   :  { %1751 = vmatprep.subr.bf16.mxu1 %v1915_v0 }
 0x104   :  { %1565 = vmatpush3.bf16.msra.mxu0 %v2003_v6 }
 0x105   :  { %1566 = vmatprep.subr.bf16.mxu0 %v2008_v7 }
 0x106   :  { %1752 = vmatpush3.bf16.msra.mxu1 %v1888_v21 }
 0x107   :  { %1753 = vmatprep.subr.bf16.mxu1 %v1915_v0 }
 0x108   :  { %1567 = vmatpush3.bf16.msra.mxu0 %v2021_v9 }
 0x109   :  { %1568 = vmatprep.subr.bf16.mxu0 %v2027_v10 }
 0x10a   :  { %1754 = vmatpush3.bf16.msra.mxu1 %v1889_v22 }
 0x10b   :  { %1593 = vmatprep.subr.bf16.mxu1 %v1971_v1 }
 0x10c   :  { %1569 = vmatpush3.bf16.msra.mxu0 %v2040_v12 }
 0x10d   :  { %1570 = vmatprep.subr.bf16.mxu0 %v2046_v13 }
 0x110   :  { %1571 = vmatpush3.bf16.msra.mxu0 %v2057_v15 }
 0x111   :  { %1572 = vmatprep.subr.bf16.mxu0 %v2063_v16 }
 0x114   :  { %1573 = vmatpush3.bf16.msra.mxu0 %v2072_v17 }
 0x115   :  { %1574 = vmatprep.subr.bf16.mxu0 %v2081_v19 }
 0x118   :  { %1575 = vmatpush3.bf16.msra.mxu0 %v2092_v23 }
 0x119   :  { %1576 = vmatprep.subr.bf16.mxu0 %v2098_v24 }
 0x11c   :  { %1577 = vmatpush3.bf16.msra.mxu0 %v2106_v25 }
 0x11d   :  { %1759 = vmatprep.subr.bf16.mxu0 %v1915_v0 }
 0x11f   :  { %575 = vmatmul.mubr.bf16.vlgmr.msra.gmra.mxu0 %v1437_v18 }
 0x120   :  { %1760 = vmatpush3.bf16.msra.mxu0 %v1978_v2  ;;  %1767 = vmatprep.mubr.msk.bf16.mxu0 %vm1916_vm0, %v1915_v0 }
 0x121   :  { %1761 = vmatprep.subr.bf16.mxu0 %v1915_v0 }
 0x124   :  { %1762 = vmatpush3.bf16.msra.mxu0 %v1997_v5 }
 0x125   :  { %1763 = vmatprep.subr.bf16.mxu0 %v1915_v0 }
 0x128   :  { %1764 = vmatpush3.bf16.msra.mxu0 %v2014_v8 }
 0x129   :  { %1765 = vmatprep.subr.bf16.mxu0 %v1915_v0 }
 0x12c   :  { %1766 = vmatpush3.bf16.msra.mxu0 %v2033_v11 }
 0x12d   :  { %1771 = vmatprep.subr.bf16.mxu0 %v1915_v0 }
 0x12f   :  { %1768 = vmatmul.mubr.msk.bf16.vlgmr.msra.gmra.mxu0 %vm208_vm1, %v1892_v26 }
 0x130   :  { %1777 = vmatprep.mubr.msk.bf16.mxu0 %vm1916_vm0, %v1915_v0  ;;  %1772 = vmatpush3.bf16.msra.mxu0 %v1893_v53 }
 0x131   :  { %1773 = vmatprep.subr.bf16.mxu0 %v1915_v0 }
 0x134   :  { %1774 = vmatpush3.bf16.msra.mxu0 %v1894_v56 }
 0x135   :  { %1775 = vmatprep.subr.bf16.mxu0 %v1915_v0 }
 0x138   :  { %1776 = vmatpush3.bf16.msra.mxu0 %v1895_v59 }
 0x139   :  { %1624 = vmatprep.subr.bf16.mxu0 %v1971_v1 }
 0x1b0   :  { %v521_v27 = vpop.f32.mrf.mxu1 }
 0x1b2   :  { %v1735_v28 = vpop.f32.mrf.mxu1 }
 0x1b4   :  { %v524_v29 = vpop.f32.mrf.mxu1 }
 0x1b6   :  { %v1736_v30 = vpop.f32.mrf.mxu1 }
 0x1b7   :  { %v859_v30 = vld [vmem:[%s2402_s0 + $0x10] sm:$0xff] }
 0x1bf   :  { %v460_v31 = vpop.f32.mrf.mxu0 }
 0x1c0   :  { %v2235_v32 = vadd.f32 %v521_v27, %v460_v31 }
 0x1c1   :  { %v1725_v33 = vpop.f32.mrf.mxu0  ;;  %v616_v34 = vpop.f32.mrf.mxu1 }
 0x1c2   :  { %v1466_v33 = vcombine.high %v859_v30, %v859_v30 }
 0x1c3   :  { %v463_v35 = vpop.f32.mrf.mxu0  ;;  %v1747_v36 = vpop.f32.mrf.mxu1 }
 0x1c5   :  { %v1726_v37 = vpop.f32.mrf.mxu0  ;;  %v619_v38 = vpop.f32.mrf.mxu1 }
 0x1c6   :  { %v1904_v38 = vld [vmem:[%s2402_s0 + $0x1c] ss:$0 sps:$4 sm:$0xff]  }
 0x1c7   :  { %v1748_v39 = vpop.f32.mrf.mxu1 }
 0x1df   :  { %v1578_v41 = vpop.f32.mrf.mxu0 }
 0x1e1   :  { %v1579_v42 = vpop.f32.mrf.mxu0 }
 0x1e2   :  { %v1580_v43 = vadd.f32 %v1579_v42, %v1578_v41 }
 0x1e3   :  { %v1581_v44 = vpop.f32.mrf.mxu0 }
 0x1e4   :  { %v577_v45 = vadd.f32 %v1580_v43, %v2166_v40 }
 0x1e5   :  { %v1582_v46 = vpop.f32.mrf.mxu0 }
 0x1e6   :  { %v617_v47 = vadd.f32 %v616_v34, %v577_v45 }
 0x1e8   :  { %v622_v49 = vmax.f32 %v617_v47, 0.0 }
 0x1ea   :  { %v630_v51 = vpack.c.bf16 %v622_v49, %v622_v49 }
 0x1ec   :  { %1756 = vmatmul.mubr.msk.bf16.vlgmr.msra.gmra.mxu1 %vm422_vm2, %v630_v51  ;;  %v1025_v51 = vld [vmem:[%s2402_s0 + $0x14] sm:$0xff] }
 0x1ed   :  { %1594 = vmatpush3.bf16.msra.mxu1 %v1984_v3  ;;  %740 = vmatprep.mubr.bf16.mxu1 %v1452_v50  ;;  %v1480_v53 = vcombine.high %v1025_v51, %v1025_v51 }
 0x1ee   :  { %1595 = vmatprep.subr.bf16.mxu1 %v1990_v4 }
 0x1ef   :  { %v782_v54 = vpop.f32.mrf.mxu0 }
 0x1f1   :  { %1596 = vmatpush3.bf16.msra.mxu1 %v2003_v6  ;;  %v1769_v55 = vpop.f32.mrf.mxu0 }
 0x1f2   :  { %1597 = vmatprep.subr.bf16.mxu1 %v2008_v7 }
 0x1f3   :  { %v785_v57 = vpop.f32.mrf.mxu0 }
 0x1f5   :  { %1598 = vmatpush3.bf16.msra.mxu1 %v2021_v9  ;;  %v1770_v58 = vpop.f32.mrf.mxu0 }
 0x1f6   :  { %1599 = vmatprep.subr.bf16.mxu1 %v2027_v10 }
 0x1f9   :  { %1600 = vmatpush3.bf16.msra.mxu1 %v2040_v12 }
 0x1fa   :  { %1601 = vmatprep.subr.bf16.mxu1 %v2046_v13 }
 0x1fd   :  { %1602 = vmatpush3.bf16.msra.mxu1 %v2057_v15 }
 0x1fe   :  { %1603 = vmatprep.subr.bf16.mxu1 %v2063_v16 }
 0x201   :  { %1604 = vmatpush3.bf16.msra.mxu1 %v2072_v17 }
 0x202   :  { %1605 = vmatprep.subr.bf16.mxu1 %v2081_v19 }
 0x205   :  { %1606 = vmatpush3.bf16.msra.mxu1 %v2092_v23 }
 0x206   :  { %1607 = vmatprep.subr.bf16.mxu1 %v2098_v24 }
 0x209   :  { %1608 = vmatpush3.bf16.msra.mxu1 %v2106_v25 }
 0x20a   :  { %1781 = vmatprep.subr.bf16.mxu1 %v1915_v0 }
 0x20c   :  { %741 = vmatmul.mubr.bf16.vlgmr.msra.gmra.mxu1 %v1451_v52 }
 0x20d   :  { %1782 = vmatpush3.bf16.msra.mxu1 %v1978_v2  ;;  %1789 = vmatprep.mubr.msk.bf16.mxu1 %vm1916_vm0, %v1915_v0 }
 0x20e   :  { %1783 = vmatprep.subr.bf16.mxu1 %v1915_v0 }
 0x211   :  { %1784 = vmatpush3.bf16.msra.mxu1 %v1997_v5 }
 0x212   :  { %1785 = vmatprep.subr.bf16.mxu1 %v1915_v0 }
 0x215   :  { %1786 = vmatpush3.bf16.msra.mxu1 %v2014_v8 }
 0x216   :  { %1787 = vmatprep.subr.bf16.mxu1 %v1915_v0 }
 0x219   :  { %1788 = vmatpush3.bf16.msra.mxu1 %v2033_v11 }
 0x21a   :  { %1793 = vmatprep.subr.bf16.mxu1 %v1915_v0 }
 0x21c   :  { %1790 = vmatmul.mubr.msk.bf16.vlgmr.msra.gmra.mxu1 %vm208_vm1, %v1898_v60 }
 0x21d   :  { %1799 = vmatprep.mubr.msk.bf16.mxu1 %vm1916_vm0, %v1915_v0 }
 0x2ac   :  { %v686_v61 = vpop.f32.mrf.mxu1 }
 0x2ad   :  { %v692_v62 = vadd.f32 %v686_v61, %v2235_v32  ;;  %v1465_v32 = vcombine.low %v859_v30, %v859_v30 }
 0x2ae   :  { %v1757_v63 = vpop.f32.mrf.mxu1 }
 0x2af   :  { %v1253_v63 = vld [vmem:[%s2406_s4] sm:$0xf] }
 0x2b0   :  { %v689_v14 = vpop.f32.mrf.mxu1 }
 0x2b1   :  { %v1264_v14 = vsel %vm1262_vm3, %v1253_v63, 0 }
 0x2b2   :  { %v1758_v18 = vpop.f32.mrf.mxu1 }
 0x2cc   :  { %v1609_v20 = vpop.f32.mrf.mxu1 }
 0x2ce   :  { %v1610_v21 = vpop.f32.mrf.mxu1 }
 0x2cf   :  { %v1611_v22 = vadd.f32 %v1610_v21, %v1609_v20  ;;  %v1192_v20 = vpop.permute.xlu0 %1191 }
 0x2d0   :  { %v1612_v26 = vpop.f32.mrf.mxu1 }
 0x2d1   :  { %v743_v27 = vadd.f32 %v1611_v22, %v2166_v40 }
 0x2d2   :  { %v1613_v28 = vpop.f32.mrf.mxu1 }
 0x2d3   :  { %v783_v29 = vadd.f32 %v782_v54, %v743_v27 }
 0x2d5   :  { %v788_v31 = vmax.f32 %v783_v29, 0.0 }
 0x2d7   :  { %v796_v34 = vpack.c.bf16 %v788_v31, %v788_v31  ;;  %v1909_v31 = vld [vmem:[%s2407_s5 + $0x8] sm:$0xff]  }
 0x2d9   :  { %1778 = vmatmul.mubr.msk.bf16.vlgmr.msra.gmra.mxu0 %vm422_vm2, %v796_v34 }
 0x2da   :  { %1625 = vmatpush3.bf16.msra.mxu0 %v1984_v3  ;;  %906 = vmatprep.mubr.bf16.mxu0 %v1466_v33  ;;  %v1206_v33 = vpop.permute.xlu0 %1205 }
 0x2db   :  { %1626 = vmatprep.subr.bf16.mxu0 %v1990_v4 }
 0x2dc   :  { %v948_v35 = vpop.f32.mrf.mxu1 }
 0x2de   :  { %1627 = vmatpush3.bf16.msra.mxu0 %v2003_v6  ;;  %v1791_v36 = vpop.f32.mrf.mxu1 }
 0x2df   :  { %1628 = vmatprep.subr.bf16.mxu0 %v2008_v7 }
 0x2e2   :  { %1629 = vmatpush3.bf16.msra.mxu0 %v2021_v9 }
 0x2e3   :  { %1630 = vmatprep.subr.bf16.mxu0 %v2027_v10 }
 0x2e6   :  { %1631 = vmatpush3.bf16.msra.mxu0 %v2040_v12 }
 0x2e7   :  { %1632 = vmatprep.subr.bf16.mxu0 %v2046_v13 }
 0x2ea   :  { %1633 = vmatpush3.bf16.msra.mxu0 %v2057_v15 }
 0x2eb   :  { %1634 = vmatprep.subr.bf16.mxu0 %v2063_v16 }
 0x2ee   :  { %1635 = vmatpush3.bf16.msra.mxu0 %v2072_v17 }
 0x2ef   :  { %1636 = vmatprep.subr.bf16.mxu0 %v2081_v19 }
 0x2f2   :  { %1637 = vmatpush3.bf16.msra.mxu0 %v2092_v23 }
 0x2f3   :  { %1638 = vmatprep.subr.bf16.mxu0 %v2098_v24 }
 0x2f6   :  { %1639 = vmatpush3.bf16.msra.mxu0 %v2106_v25 }
 0x2f7   :  { %1803 = vmatprep.subr.bf16.mxu0 %v1915_v0 }
 0x2f9   :  { %907 = vmatmul.mubr.bf16.vlgmr.msra.gmra.mxu0 %v1465_v32 }
 0x2fa   :  { %1804 = vmatpush3.bf16.msra.mxu0 %v1978_v2  ;;  %1811 = vmatprep.mubr.msk.bf16.mxu0 %vm1916_vm0, %v1915_v0  ;;  %v1899_v2 = vld [vmem:[%s2403_s2 + $0x70] sm:$0xff]  }
 0x2fb   :  { %1805 = vmatprep.subr.bf16.mxu0 %v1915_v0  ;;  %1794 = vmatpush3.bf16.msra.mxu1 %v1899_v2 }
 0x2fc   :  { %1795 = vmatprep.subr.bf16.mxu1 %v1915_v0 }
 0x2fe   :  { %1806 = vmatpush3.bf16.msra.mxu0 %v1997_v5  ;;  %v1900_v5 = vld [vmem:[%s2403_s2 + $0x68] sm:$0xff]  }
 0x2ff   :  { %1807 = vmatprep.subr.bf16.mxu0 %v1915_v0  ;;  %1796 = vmatpush3.bf16.msra.mxu1 %v1900_v5 }
 0x300   :  { %1797 = vmatprep.subr.bf16.mxu1 %v1915_v0 }
 0x302   :  { %1808 = vmatpush3.bf16.msra.mxu0 %v2014_v8  ;;  %v951_v8 = vpop.f32.mrf.mxu1 }
 0x303   :  { %1809 = vmatprep.subr.bf16.mxu0 %v1915_v0 }
 0x304   :  { %v1792_v37 = vpop.f32.mrf.mxu1 }
 0x305   :  { %v1910_v37 = vld [vmem:[%s2407_s5] sm:$0xff]  }
 0x306   :  { %1810 = vmatpush3.bf16.msra.mxu0 %v2033_v11  ;;  %v1901_v11 = vld [vmem:[%s2403_s2 + $0x60] sm:$0xff]  }
 0x307   :  { %1815 = vmatprep.subr.bf16.mxu0 %v1915_v0  ;;  %1798 = vmatpush3.bf16.msra.mxu1 %v1901_v11 }
 0x308   :  { %1655 = vmatprep.subr.bf16.mxu1 %v1971_v1 }
 0x309   :  { %1812 = vmatmul.mubr.msk.bf16.vlgmr.msra.gmra.mxu0 %vm208_vm1, %v1904_v38 }
 0x30a   :  { %1821 = vmatprep.mubr.msk.bf16.mxu0 %vm1916_vm0, %v1915_v0 }
 0x399   :  { %v852_v39 = vpop.f32.mrf.mxu0 }
 0x39a   :  { %v858_v41 = vadd.f32 %v852_v39, %v692_v62  ;;  %v1908_v62 = vld [vmem:[%s2405_s3] sm:$0xff]   ;;  %s1919_s3 = smov 56  }
 0x39b   :  { %v1779_v42 = vpop.f32.mrf.mxu0  ;;  %1255 = vrot.lane.b32.xlu1 %v2166_v40, %s1919_s3 }
 0x39d   :  { %v855_v43 = vpop.f32.mrf.mxu0 }
 0x39f   :  { %v1780_v44 = vpop.f32.mrf.mxu0  ;;  %1324 = vrot.lane.b32.xlu1 %v2166_v40, %s1920_s21 }
 0x3b9   :  { %v1640_v45 = vpop.f32.mrf.mxu0 }
 0x3bb   :  { %v1641_v46 = vpop.f32.mrf.mxu0 }
 0x3bc   :  { %v1642_v47 = vadd.f32 %v1641_v46, %v1640_v45 }
 0x3bd   :  { %v1643_v48 = vpop.f32.mrf.mxu0 }
 0x3be   :  { %v909_v1 = vadd.f32 %v1642_v47, %v2166_v40 }
 0x3bf   :  { %v1644_v49 = vpop.f32.mrf.mxu0 }
 0x3c0   :  { %v949_v50 = vadd.f32 %v948_v35, %v909_v1 }
 0x3c2   :  { %v954_v52 = vmax.f32 %v949_v50, 0.0 }
 0x3c4   :  { %v962_v54 = vpack.c.bf16 %v954_v52, %v954_v52 }
 0x3c6   :  { %1800 = vmatmul.mubr.msk.bf16.vlgmr.msra.gmra.mxu1 %vm422_vm2, %v962_v54 }
 0x3c7   :  { %1656 = vmatpush3.bf16.msra.mxu1 %v1984_v3  ;;  %1072 = vmatprep.mubr.bf16.mxu1 %v1480_v53  ;;  %v1479_v3 = vcombine.low %v1025_v51, %v1025_v51 }
 0x3c8   :  { %1657 = vmatprep.subr.bf16.mxu1 %v1990_v4 }
 0x3c9   :  { %v1114_v4 = vpop.f32.mrf.mxu0 }
 0x3cb   :  { %1658 = vmatpush3.bf16.msra.mxu1 %v2003_v6  ;;  %v1905_v6 = vld [vmem:[%s2403_s2 + $0x88] sm:$0xff]  }
 0x3cc   :  { %1659 = vmatprep.subr.bf16.mxu1 %v2008_v7  ;;  %v1813_v7 = vpop.f32.mrf.mxu0  ;;  %1816 = vmatpush3.bf16.msra.mxu0 %v1905_v6 }
 0x3cd   :  { %1817 = vmatprep.subr.bf16.mxu0 %v1915_v0 }
 0x3cf   :  { %1660 = vmatpush3.bf16.msra.mxu1 %v2021_v9  ;;  %v1117_v9 = vpop.f32.mrf.mxu0 }
 0x3d0   :  { %1661 = vmatprep.subr.bf16.mxu1 %v2027_v10  ;;  %v1906_v10 = vld [vmem:[%s2403_s2 + $0x80] sm:$0xff]  }
 0x3d1   :  { %1818 = vmatpush3.bf16.msra.mxu0 %v1906_v10 }
 0x3d2   :  { %1819 = vmatprep.subr.bf16.mxu0 %v1915_v0 }
 0x3d3   :  { %1662 = vmatpush3.bf16.msra.mxu1 %v2040_v12  ;;  %v1814_v12 = vpop.f32.mrf.mxu0 }
 0x3d4   :  { %1663 = vmatprep.subr.bf16.mxu1 %v2046_v13  ;;  %v1907_v13 = vld [vmem:[%s2403_s2 + $0x78] sm:$0xff]  }
 0x3d5   :  { %1820 = vmatpush3.bf16.msra.mxu0 %v1907_v13 }
 0x3d6   :  { %1825 = vmatprep.subr.bf16.mxu0 %v1915_v0 }
 0x3d7   :  { %1664 = vmatpush3.bf16.msra.mxu1 %v2057_v15 }
 0x3d8   :  { %1665 = vmatprep.subr.bf16.mxu1 %v2063_v16 }
 0x3db   :  { %1666 = vmatpush3.bf16.msra.mxu1 %v2072_v17 }
 0x3dc   :  { %1667 = vmatprep.subr.bf16.mxu1 %v2081_v19 }
 0x3df   :  { %1668 = vmatpush3.bf16.msra.mxu1 %v2092_v23 }
 0x3e0   :  { %1669 = vmatprep.subr.bf16.mxu1 %v2098_v24 }
 0x3e3   :  { %1670 = vmatpush3.bf16.msra.mxu1 %v2106_v25 }
 0x3e4   :  { %1831 = vmatprep.subr.bf16.mxu1 %v1915_v0 }
 0x3e6   :  { %1073 = vmatmul.mubr.bf16.vlgmr.msra.gmra.mxu1 %v1479_v3 }
 0x3e7   :  { %1833 = vmatprep.mubr.msk.bf16.mxu1 %vm1916_vm0, %v1915_v0  ;;  %1832 = vmatpush3.bf16.msra.mxu1 %v1264_v14 }
 0x40d   :  { %v1256_v11 = vpop.permute.xlu1 %1255 }
 0x411   :  { %v1325_v45 = vpop.permute.xlu1 %1324 }
 0x486   :  { %v1018_v15 = vpop.f32.mrf.mxu1 }
 0x487   :  { %v1024_v16 = vadd.f32 %v1018_v15, %v858_v41 }
 0x488   :  { %v1801_v17 = vpop.f32.mrf.mxu1 }
 0x48a   :  { %v1021_v19 = vpop.f32.mrf.mxu1 }
 0x48c   :  { %v1802_v23 = vpop.f32.mrf.mxu1 }
 0x4a6   :  { %v1671_v24 = vpop.f32.mrf.mxu1 }
 0x4a8   :  { %v1672_v25 = vpop.f32.mrf.mxu1 }
 0x4a9   :  { %v1673_v55 = vadd.f32 %v1672_v25, %v1671_v24 }
 0x4aa   :  { %v1674_v56 = vpop.f32.mrf.mxu1 }
 0x4ab   :  { %v1075_v57 = vadd.f32 %v1673_v55, %v2166_v40 }
 0x4ac   :  { %v1675_v58 = vpop.f32.mrf.mxu1 }
 0x4ad   :  { %v1115_v59 = vadd.f32 %v1114_v4, %v1075_v57 }
 0x4af   :  { %v1120_v60 = vmax.f32 %v1115_v59, 0.0 }
 0x4b1   :  { %v1128_v61 = vpack.c.bf16 %v1120_v60, %v1120_v60 }
 0x4b3   :  { %1822 = vmatmul.mubr.msk.bf16.vlgmr.msra.gmra.mxu0 %vm422_vm2, %v1128_v61 }
 0x4b4   :  { %1827 = vmatprep.mubr.msk.bf16.mxu0 %vm1916_vm0, %v1915_v0  ;;  %1826 = vmatpush3.bf16.msra.mxu0 %v1908_v62 }
 0x4b5   :  { %1837 = vmatprep.subr.bf16.mxu0 %v1915_v0 }
 0x573   :  { %v1184_v18 = vpop.f32.mrf.mxu0 }
 0x574   :  { %v1190_v21 = vadd.f32 %v1184_v18, %v1024_v16 }
 0x575   :  { %v1823_v22 = vpop.f32.mrf.mxu0 }
 0x576   :  { %v1194_v26 = vadd.f32 %v1192_v20, %v1190_v21 }
 0x577   :  { %v1187_v27 = vpop.f32.mrf.mxu0 }
 0x578   :  { %v1195_v28 = vmax.f32 %v1194_v26, 0.0 }
 0x579   :  { %v1824_v29 = vpop.f32.mrf.mxu0 }
 0x57a   :  { %v1198_v30 = vpack.c.bf16 %v1195_v28, %v1195_v28 }
 0x57c   :  { %1828 = vmatmul.mubr.msk.bf16.vlgmr.msra.gmra.mxu0 %vm1208_vm4, %v1198_v30 }
 0x57d   :  { %1841 = vmatprep.mubr.msk.bf16.mxu0 %vm1916_vm0, %v1915_v0  ;;  %1838 = vmatpush3.bf16.msra.mxu0 %v1909_v31 }
 0x57e   :  { %1839 = vmatprep.subr.bf16.mxu0 %v1915_v0 }
 0x581   :  { %1840 = vmatpush3.bf16.msra.mxu0 %v1910_v37 }
 0x63c   :  { %v1246_v34 = vpop.f32.mrf.mxu0 }
 0x63d   :  { %v1247_v32 = vadd.f32 %v1246_v34, %v1206_v33 }
 0x63e   :  { %v1829_v2 = vpop.f32.mrf.mxu0 }
 0x63f   :  { %v1252_v35 = vmax.f32 %v1247_v32, 0.0 }
 0x640   :  { %v1249_v36 = vpop.f32.mrf.mxu0 }
 0x641   :  { %v1254_v5 = vpack.c.bf16 %v1252_v35, %v1252_v35 }
 0x642   :  { %v1830_v8 = vpop.f32.mrf.mxu0 }
 0x643   :  { %1834 = vmatmul.mubr.msk.bf16.vlgmr.msra.gmra.mxu1 %vm1258_vm5, %v1254_v5 }
 0x703   :  { %v1300_v0 = vpop.f32.mrf.mxu1 }
 0x704   :  { %v1301_v38 = vadd.f32 %v1300_v0, %v1256_v11 }
 0x705   :  { %v1835_v39 = vpop.f32.mrf.mxu1 }
 0x706   :  { %v1306_v41 = vmax.f32 %v1301_v38, 0.0 }
 0x707   :  { %v1303_v42 = vpop.f32.mrf.mxu1 }
 0x708   :  { %v1311_v43 = vpack.c.bf16 %v1306_v41, %v1306_v41 }
 0x709   :  { %v1836_v44 = vpop.f32.mrf.mxu1 }
 0x70a   :  { %1842 = vmatmul.mubr.msk.bf16.vlgmr.msra.gmra.mxu0 %vm1327_vm6, %v1311_v43 }
 0x7ca   :  { %v1365_v46 = vpop.f32.mrf.mxu0 }
 0x7cb   :  { %v1366_v47 = vadd.f32 %v1365_v46, %v1325_v45 }
 0x7cc   :  { %v1843_v48 = vpop.f32.mrf.mxu0 }
 0x7cd   :  { %v1371_v1 = vmax.f32 %v1366_v47, 0.0  ;;  %v1499_v49 = vmul.f32 -1.442695, %v1366_v47 }
 0x7ce   :  { %v1368_v50 = vpop.f32.mrf.mxu0 }
 0x7cf   :  { %1373 = vst.msk [vmem:[%s2408_s7] sm:$0xff] %vm1372_vm7, %v1371_v1  ;;  %1911 = vpow2.f32 %v1499_v49 }
 0x7d0   :  { %v1844_v40 = vpop.f32.mrf.mxu0 }
 0x7dc   :  { %v1912_v51 = vpop.eup %1911 }
 0x7dd   :  { %v1377_v52 = vadd.f32 1.0, %v1912_v51 }
 0x7df   :  { %1913 = vrcp.f32 %v1377_v52 }
 0x7ec   :  { %v1914_v53 = vpop.eup %1913 }
 0x7ed   :  { %1381 = vrot.lane.b32.xlu0 %v1914_v53, %s1921_s22 }
 0x85f   :  { %v1382_v54 = vpop.permute.xlu0 %1381 }
 0x860   :  { %1385 = vst.msk [vmem:[%s2409_s8] sm:$0xff] %vm1384_vm8, %v1382_v54 }

</bundles_post_ra>
